<compile_context>
chip_gen: v6e
topology: v6e:2x2x1
jax: 0.10.0
libtpu: 0.0.40
codegen_flags: <defaults>
</compile_context>

<pallas_src>
import jax
import jax.numpy as jnp
from jax.experimental import pallas as pl
from jax.experimental.pallas import tpu as pltpu


def _round_up(x: int, m: int) -> int:
    return ((x + m - 1) // m) * m


def _balanced_tile(dim: int, target: int, align: int) -> int:
    """Tile size of roughly <= target, multiple of `align`, minimal padding."""
    n_blocks = max(1, -(-dim // target))
    return _round_up(-(-dim // n_blocks), align)


def _vmem_capacity_bytes() -> int:
    try:
        info = pltpu.get_tpu_info()
        cap = getattr(info, "vmem_capacity_bytes", None)
        if cap:
            return int(cap)
    except Exception:
        pass
    return 64 * 1024 * 1024  # conservative (v7x per-TC)


# ----------------------------- kernels ---------------------------------------


def _mhl_kernel_single_k(x_ref, w_ref, b_ref, o_ref):
    """Single reduction step: write (x @ W + b) directly, no accumulator."""
    acc = jnp.dot(x_ref[...], w_ref[...], preferred_element_type=jnp.float32)
    o_ref[...] = (acc + b_ref[...]).astype(o_ref.dtype)


def _mhl_kernel_acc_out(x_ref, w_ref, b_ref, o_ref):
    """K-split, f32 output: the resident output block IS the accumulator."""
    @pl.when(pl.program_id(2) == 0)
    def _init():
        o_ref[...] = jnp.broadcast_to(b_ref[...], o_ref.shape)

    o_ref[...] += jnp.dot(x_ref[...], w_ref[...],
                          preferred_element_type=jnp.float32)


def _mhl_kernel_scratch(x_ref, w_ref, b_ref, o_ref, acc_ref):
    """K-split, non-f32 output: f32 VMEM scratch accumulator."""
    k = pl.program_id(2)

    @pl.when(k == 0)
    def _init():
        acc_ref[...] = jnp.broadcast_to(b_ref[...], acc_ref.shape)

    acc_ref[...] += jnp.dot(x_ref[...], w_ref[...],
                            preferred_element_type=jnp.float32)

    @pl.when(k == pl.num_programs(2) - 1)
    def _store():
        o_ref[...] = acc_ref[...].astype(o_ref.dtype)


# ----------------------------- wrapper ----------------------------------------


def multihead_linear(x, w, b, num_heads, out_features, *,
                     batch_tile=None, n_tile=None, k_tile=None,
                     compute_dtype=jnp.bfloat16):
    """y = reshape(x @ w + b, (batch, num_heads, out_features)) via Pallas."""
    batch, in_features = x.shape
    total_out = num_heads * out_features
    assert w.shape == (in_features, total_out), w.shape
    assert b.shape == (1, total_out), b.shape

    out_dtype = x.dtype
    cdtype = jnp.dtype(compute_dtype)

    # --- tile selection -------------------------------------------------------
    # M (batch): multiple of 16 sublanes (legal for f32 and bf16 alike).
    if batch_tile is not None:
        tm = _round_up(int(batch_tile), 16)
    else:
        tm = _balanced_tile(batch, 1024, 16)
    tm = min(tm, _round_up(batch, 16))
    Mp = _round_up(batch, tm)

    # N (num_heads*out_features): lane-dense; 256-aligned when large (full-width
    # passes on the 2x256^2 MXU of v6e/v7x; 256 is also a multiple of v5e's 128).
    if n_tile is not None:
        tn = _round_up(int(n_tile), 128)
    elif total_out <= 256:
        tn = _round_up(total_out, 128)
    else:
        tn = _balanced_tile(_round_up(total_out, 256), 1024, 256)
    Np = _round_up(total_out, tn)

    # K (in_features): full-K single reduction step when it fits comfortably
    # (no K padding, no extra pad pass of x/W); otherwise ~512, 256-aligned.
    if k_tile is not None:
        tk = int(k_tile)
        tk = in_features if tk >= in_features else _round_up(tk, 128)
    elif in_features <= 2048:
        tk = in_features
    else:
        tk = _balanced_tile(in_features, 512, 256)
    Kp = _round_up(in_features, tk)

    # Guarantee >= 2 parallel grid blocks where possible (v7x has 2 TCs).
    if (Mp // tm) * (Np // tn) < 2:
        if batch >= 32:
            tm = _round_up(-(-batch // 2), 16)
            Mp = _round_up(batch, tm)
        elif total_out >= 256:
            tn = max(128, _round_up(-(-total_out // 2), 128))
            Np = _round_up(total_out, tn)

    gm, gn, nk = Mp // tm, Np // tn, Kp // tk

    # --- operand prep (cast/pad only when needed; zero K-pad is exact) ---------
    xp = x if x.dtype == cdtype else x.astype(cdtype)
    wp = w if w.dtype == cdtype else w.astype(cdtype)
    bp = b if b.dtype == jnp.float32 else b.astype(jnp.float32)
    if Mp != batch or Kp != in_features:
        xp = jnp.pad(xp, ((0, Mp - batch), (0, Kp - in_features)))
    if Kp != in_features or Np != total_out:
        wp = jnp.pad(wp, ((0, Kp - in_features), (0, Np - total_out)))
    if Np != total_out:
        bp = jnp.pad(bp, ((0, 0), (0, Np - total_out)))

    # --- kernel variant selection ----------------------------------------------
    if nk == 1:
        kernel = _mhl_kernel_single_k
        scratch = []
    elif jnp.dtype(out_dtype) == jnp.float32:
        kernel = _mhl_kernel_acc_out          # accumulate into resident output
        scratch = []
    else:
        kernel = _mhl_kernel_scratch
        scratch = [pltpu.VMEM((tm, tn), jnp.float32)]

    # --- VMEM budget: double-buffered in/out tiles (+ scratch), capped at 3/4 of
    # physical VMEM so Mosaic keeps headroom for its own scratch (key on v7x).
    isz = jnp.dtype(cdtype).itemsize
    osz = jnp.dtype(out_dtype).itemsize
    acc_bytes = tm * tn * 4 if scratch else 0
    footprint = (2 * tm * tk * isz + 2 * tk * tn * isz + 2 * tn * 4
                 + 2 * tm * tn * osz + acc_bytes)
    cap = (_vmem_capacity_bytes() * 3) // 4
    vmem_limit = int(min(max(footprint * 5 // 4 + (4 << 20), 32 << 20), cap))

    cost = pl.CostEstimate(
        flops=int(2 * Mp * Kp * Np),
        transcendentals=0,
        bytes_accessed=int(gn * Mp * Kp * isz        # x read once per N tile
                           + gm * Kp * Np * isz      # W read once per M tile
                           + Mp * Np * osz           # output written once
                           + gm * Np * 4),           # bias
    )

    y_flat = pl.pallas_call(
        kernel,
        out_shape=jax.ShapeDtypeStruct((Mp, Np), out_dtype),
        grid_spec=pltpu.PrefetchScalarGridSpec(
            num_scalar_prefetch=0,
            grid=(gm, gn, nk),
            in_specs=[
                pl.BlockSpec((tm, tk), lambda i, j, k: (i, k)),   # x tile
                pl.BlockSpec((tk, tn), lambda i, j, k: (k, j)),   # W tile
                pl.BlockSpec((1, tn), lambda i, j, k: (0, j)),    # bias (f32)
            ],
            out_specs=pl.BlockSpec((tm, tn), lambda i, j, k: (i, j)),
            scratch_shapes=scratch,
        ),
        compiler_params=pltpu.CompilerParams(
            dimension_semantics=("parallel", "parallel", "arbitrary"),
            vmem_limit_bytes=vmem_limit,
            allow_input_fusion=[True, True, True],
        ),
        cost_estimate=cost,
    )(xp, wp, bp)

    return y_flat[:batch, :total_out].reshape(batch, num_heads, out_features)


def multihead_linear_ref(x, w, b, num_heads, out_features):
    return (x @ w + b).reshape(x.shape[0], num_heads, out_features)


if __name__ == "__main__":
    key = jax.random.PRNGKey(0)
    kx, kw, kb, kx2, kw2, kb2 = jax.random.split(key, 6)

    # --- small config (matches the module's forward: x (batch, in_features)) ---
    batch, in_features, num_heads, out_features = 8, 32, 4, 8
    total_out = num_heads * out_features

    x = jax.random.normal(kx, (batch, in_features), dtype=jnp.float32)
    w = jax.random.normal(kw, (in_features, total_out), dtype=jnp.float32) * 0.05
    b = jax.random.normal(kb, (1, total_out), dtype=jnp.float32) * 0.01
    y_ref = multihead_linear_ref(x, w, b, num_heads, out_features)

    # f32 compute path (single-K kernel), tight tolerance.
    y_f32 = jax.block_until_ready(
        multihead_linear(x, w, b, num_heads, out_features,
                         compute_dtype=jnp.float32))
    assert y_f32.shape == (batch, num_heads, out_features)
    assert jnp.allclose(y_f32, y_ref, atol=1e-4, rtol=1e-4)

    # Default bf16 compute path (f32 accumulate + f32 bias), loose tolerance.
    y_bf = jax.block_until_ready(
        multihead_linear(x, w, b, num_heads, out_features))
    assert jnp.allclose(y_bf, y_ref, atol=5e-2, rtol=5e-2)

    # --- ragged dims + multi-step M/K grid; f32 output-resident accumulator ----
    batch2, in2, heads2, out2 = 272, 200, 8, 24
    x2 = jax.random.normal(kx2, (batch2, in2), dtype=jnp.float32)
    w2 = jax.random.normal(kw2, (in2, heads2 * out2), dtype=jnp.float32) * 0.05
    b2 = jax.random.normal(kb2, (1, heads2 * out2), dtype=jnp.float32) * 0.01
    y2_ref = multihead_linear_ref(x2, w2, b2, heads2, out2)

    y2 = jax.block_until_ready(
        multihead_linear(x2, w2, b2, heads2, out2,
                         batch_tile=128, k_tile=128, compute_dtype=jnp.float32))
    assert y2.shape == (batch2, heads2, out2)
    assert jnp.allclose(y2, y2_ref, atol=1e-4, rtol=1e-4)

    # bf16 inputs + K-splitting -> scratch-accumulator variant, bf16 output.
    y2b = jax.block_until_ready(
        multihead_linear(x2.astype(jnp.bfloat16), w2.astype(jnp.bfloat16), b2,
                         heads2, out2, batch_tile=128, k_tile=128))
    assert y2b.dtype == jnp.bfloat16
    assert jnp.allclose(y2b.astype(jnp.float32), y2_ref, atol=5e-2, rtol=5e-2)

    print("KERNEL_OK")
</pallas_src>

<mosaic_0001>
module attributes {stable_mosaic.version = 11 : i64} {
  func.func @_mhl_kernel_single_k(%arg0: i32, %arg1: i32, %arg2: i32, %arg3: memref<16x32xf32, #tpu.memory_space<vmem>>, %arg4: memref<32x128xf32, #tpu.memory_space<vmem>>, %arg5: memref<1x128xf32, #tpu.memory_space<vmem>>, %arg6: memref<16x128xf32, #tpu.memory_space<vmem>>) attributes {dimension_semantics = [#tpu.dimension_semantics<parallel>, #tpu.dimension_semantics<parallel>, #tpu.dimension_semantics<arbitrary>], iteration_bounds = array<i64: 1, 1, 1>, scalar_prefetch = 0 : i64, scratch_operands = 0 : i64, tpu.core_type = #tpu.core_type<tc>, window_params = [{transform_indices = @transform_0, window_bounds = array<i64: 16, 32>}, {transform_indices = @transform_1, window_bounds = array<i64: 32, 128>}, {transform_indices = @transform_2, window_bounds = array<i64: 1, 128>}, {transform_indices = @transform_3, window_bounds = array<i64: 16, 128>}]} {
    %c0 = arith.constant 0 : index
    %c0_0 = arith.constant 0 : index
    %0 = vector.load %arg3[%c0, %c0_0] : memref<16x32xf32, #tpu.memory_space<vmem>>, vector<16x32xf32>
    %c0_1 = arith.constant 0 : index
    %c0_2 = arith.constant 0 : index
    %1 = vector.load %arg4[%c0_1, %c0_2] : memref<32x128xf32, #tpu.memory_space<vmem>>, vector<32x128xf32>
    %cst = arith.constant dense<0.000000e+00> : vector<16x128xf32>
    %2 = tpu.matmul %0, %1, %cst {dimension_numbers = #tpu.dot_dimension_numbers<[1], [0], [0], [1], [0, 0, 1, 1], [], []>} : vector<16x32xf32>, vector<32x128xf32>, vector<16x128xf32> -> vector<16x128xf32>
    %c0_3 = arith.constant 0 : index
    %c0_4 = arith.constant 0 : index
    %3 = vector.load %arg5[%c0_3, %c0_4] : memref<1x128xf32, #tpu.memory_space<vmem>>, vector<1x128xf32>
    %4 = vector.broadcast %3 : vector<1x128xf32> to vector<16x128xf32>
    %5 = arith.addf %2, %4 : vector<16x128xf32>
    %c0_5 = arith.constant 0 : index
    %c0_6 = arith.constant 0 : index
    %6 = vector.load %arg6[%c0_5, %c0_6] : memref<16x128xf32, #tpu.memory_space<vmem>>, vector<16x128xf32>
    tpu.vector_store %arg6[%c0_5, %c0_6], %5 {strides = array<i32>} : memref<16x128xf32, #tpu.memory_space<vmem>>, vector<16x128xf32>,
    return
  }
  func.func @transform_0(%arg0: i32, %arg1: i32, %arg2: i32) -> (i32, i32) {
    %c0_i32 = arith.constant 0 : i32
    return %arg0, %arg2 : i32, i32
  }
  func.func @transform_1(%arg0: i32, %arg1: i32, %arg2: i32) -> (i32, i32) {
    %c0_i32 = arith.constant 0 : i32
    return %arg2, %arg1 : i32, i32
  }
  func.func @transform_2(%arg0: i32, %arg1: i32, %arg2: i32) -> (i32, i32) {
    %c0_i32 = arith.constant 0 : i32
    %c0_i32_0 = arith.constant 0 : i32
    return %c0_i32, %arg1 : i32, i32
  }
  func.func @transform_3(%arg0: i32, %arg1: i32, %arg2: i32) -> (i32, i32) {
    %c0_i32 = arith.constant 0 : i32
    return %arg0, %arg1 : i32, i32
  }
}

</mosaic_0001>

<bundles_post_ra>
// kernel: tpu_custom_call.1
= control target key start
LH: loop header
LB: loop body
LE: loop exit
PB: predicated region body
PF: predicated region fallthrough
CT: control target
= control target key end

     0   :  { %8 = vsyncpa [#allocation3], 0  ;;  %s297_s0 = inlined_call_operand.hbm [shape: f32[16,32], index: 0, kind: input, shape index: {}]   ;;  %s298_s1 = inlined_call_operand.hbm [shape: f32[32,128], index: 1, kind: input, shape index: {}]   ;;  %s299_s2 = inlined_call_operand.vmem [shape: f32[1,128], index: 2, kind: input, shape index: {}]   ;;  %s300_s3 = inlined_call_operand.hbm [shape: f32[16,128], index: 3, kind: output, shape index: {}]  }
   0x1   :  { %9 = vsyncpa [#allocation6], 0 }
   0x2   :  { %10 = vsyncpa [#allocation4], 0  ;;  %s249_s12 = smov [#allocation2]  }
   0x3   :  { %s16_s13 = sshll.u32 %s249_s12, 4  ;;  %s17_s13 = int_to_ptr.vmem [resolvable:$true] %s16_s13 }
   0x4   :  { %s191_s14 = scalar_lea.vmem %s17_s13, 256  ;;  %p196_p1 = scmp.lt.s32.totalorder %s17_s13, %s17_s13 }
   0x5   :  { %p192_p0 = scmp.ne.s32.totalorder %s17_s13, %s191_s14  ;;  %p197_p2 = scmp.lt.s32.totalorder %s191_s14, %s191_s14 }
   0x7   :  { %p198_p3 = por %p197_p2, %p196_p1 }
   0x9   :  { %p199_p4 = pnand %p198_p3, %p192_p0 }
   0xb   :  { %202 = shalt.err (!%p199_p4)
}
   0xc   :  { %s250_s15 = smov 128   ;;  %s251_s16 = smov 8  }
   0xd   :  { %22 = dma.hbm_to_vmem [thread:$0]  %s297_s0, 256, %s17_s13, [#allocation3], %s250_s15, %s250_s15, %s251_s16  }
   0xe   :  { %s252_s19 = smov [#allocation5]  }
   0xf   :  { %s28_s20 = sshll.u32 %s252_s19, 4  ;;  %s29_s20 = int_to_ptr.vmem [resolvable:$true] %s28_s20 }
  0x10   :  { %s211_s21 = scalar_lea.vmem %s29_s20, 512  ;;  %p216_p6 = scmp.lt.s32.totalorder %s29_s20, %s29_s20 }
  0x11   :  { %p212_p5 = scmp.ne.s32.totalorder %s29_s20, %s211_s21  ;;  %p217_p7 = scmp.lt.s32.totalorder %s211_s21, %s211_s21 }
  0x13   :  { %p218_p8 = por %p217_p7, %p216_p6 }
  0x15   :  { %p219_p9 = pnand %p218_p8, %p212_p5 }
  0x17   :  { %222 = shalt.err (!%p219_p9)
}
  0x18   :  { %34 = dma.hbm_to_vmem [thread:$0]  %s298_s1, 512, %s29_s20, [#allocation6], %s250_s15, %s250_s15, %s251_s16  }
  0x19   :  { %243 = dma.done.wait [#allocation3], 256  }
  0x1a   :  { %244 = vsyncadd [#allocation3], 4294967040 }
  0x1b   :  { %245 = dma.done.wait [#allocation6], 512  }
  0x1c   :  { %246 = vsyncadd [#allocation6], 4294966784  ;;  %vm56_vm0 = vcmask 261120   ;;  %v48_v0 = vld [vmem:[#allocation5 + $0x18] sm:$0xff]  ;;  %v47_v1 = vld [vmem:[#allocation5 + $0x10] sm:$0xff]  ;;  %s253_s24 = smov [#allocation7]  }
  0x1d   :  { %167 = vmatprep.subr.mxu0 %v48_v0  ;;  %v43_v2 = vld [vmem:[#allocation2] sm:$0xff]  ;;  %v46_v3 = vld [vmem:[#allocation5 + $0x8] sm:$0xff]  ;;  %v45_v4 = vld [vmem:[#allocation5] sm:$0xff]  ;;  %s145_s25 = sshll.u32 %s253_s24, 4  ;;  %s146_s25 = int_to_ptr.vmem [resolvable:$true] %s145_s25 }
  0x1e   :  { %168 = vmatpush3.msra.mxu0 %v48_v0  ;;  %175 = vmatprep.mubr.msk.f32.mxu0 %vm56_vm0, %v43_v2  ;;  %v44_v5 = vld [vmem:[#allocation2 + $0x8] sm:$0xff]  ;;  %v158_v6 = vld [vmem:[%s299_s2] ss:$0 sm:$0xff]  ;;  %s223_s26 = scalar_lea.vmem %s146_s25, 256  ;;  %p228_p11 = scmp.lt.s32.totalorder %s146_s25, %s146_s25 }
  0x1f   :  { %169 = vmatprep.subr.mxu0 %v47_v1  ;;  %p224_p10 = scmp.ne.s32.totalorder %s146_s25, %s223_s26  ;;  %p229_p12 = scmp.lt.s32.totalorder %s223_s26, %s223_s26 }
  0x20   :  { %170 = vmatpush3.msra.mxu0 %v47_v1 }
  0x21   :  { %171 = vmatprep.subr.mxu0 %v46_v3  ;;  %p230_p13 = por %p229_p12, %p228_p11 }
  0x22   :  { %172 = vmatpush3.msra.mxu0 %v46_v3 }
  0x23   :  { %173 = vmatprep.subr.mxu0 %v45_v4  ;;  %p231_p0 = pnand %p230_p13, %p224_p10 }
  0x24   :  { %174 = vmatpush3.msra.mxu0 %v45_v4 }
  0x25   :  { %176 = vmatmul.mubr.msk.f32.vlgmr.msra.gmra.mxu0 %vm56_vm0, %v44_v5 }
  0xe5   :  { %v177_v7 = vpop.f32.mrf.mxu0 }
  0xe6   :  { %v135_v8 = vadd.f32 %v177_v7, %v158_v6 }
  0xe7   :  { %v129_v9 = vpop.f32.mrf.mxu0 }
  0xe8   :  { %139 = vst [vmem:[#allocation7 + $0x8] sm:$0xff] %v135_v8  ;;  %v130_v10 = vadd.f32 %v158_v6, %v129_v9 }
  0xea   :  { %138 = vst [vmem:[#allocation7] sm:$0xff] %v130_v10 }
  0xeb   :  { %234 = shalt.err (!%p231_p0)
}
  0xec   :  { %151 = dma.vmem_to_hbm [thread:$0]  %s146_s25, 256, %s300_s3, [#allocation4], %s250_s15, %s250_s15, %s251_s16  }
  0xed   :  { %247 = dma.done.wait [#allocation4], 256  }
  0xee   :  { %248 = vsyncadd [#allocation4], 4294967040 }
  0xef   :  { %155 = vsyncpa [#allocation3], 1 }
  0xf0   :  { %156 = vsyncpa [#allocation6], 1 }
  0xf1   :  { %157 = vsyncpa [#allocation4], 1 }

</bundles_post_ra>
